<compile_context>
chip_gen: v6e
topology: v6e:2x2x1
jax: 0.10.0
libtpu: 0.0.40
codegen_flags: <defaults>
</compile_context>

<pallas_src>
import functools

import jax
import jax.numpy as jnp
from jax import lax
from jax.experimental import pallas as pl
from jax.experimental.pallas import tpu as pltpu

_LANE = 128


def _round_up(x, m):
    return (x + m - 1) // m * m


def _up_kernel(x1_ref, x2_ref, wup0_ref, wup1_ref, bup_ref,
               wc0_ref, wc1_ref, wc2_ref, bc_ref, o_ref, *, pad_left):
    """One batch element per grid step; everything 2-D and lane-dense.

    x1_ref : (1, L1, Cin_p)        input of the transposed conv        (bf16)
    x2_ref : (1, 2, L2h, Cmid_p)   skip connection, even/odd rows      (bf16)
    wup*   : (Cin_p, Cmid_p)       deconv weight, taps k=0,1           (bf16)
    bup    : (1, Cmid_p)           deconv bias                         (f32)
    wc*    : (Ccat_p, Cout_p)      conv weights, taps k=0,1,2, rows packed as
                                   [x2 channel band | upsample band]   (bf16)
    bc     : (1, Cout_p)           conv bias                           (f32)
    o_ref  : (1, 2, L2h, Cout_p)   even / odd output rows              (f32)
    """
    f32 = jnp.float32
    cdt = x1_ref.dtype
    L1 = x1_ref.shape[1]
    L2h = x2_ref.shape[2]
    cmid_p = wup0_ref.shape[1]

    # ---- ConvTranspose1d(Cin -> Cmid, kernel=2, stride=2): one matmul per tap.
    # up_k[l] = x1[l] @ Wup_k + bup lands at (pre-pad) output position 2*l + k.
    x1 = x1_ref[0]                                                # (L1, Cin_p)
    up0 = (jnp.dot(x1, wup0_ref[...], preferred_element_type=f32)
           + bup_ref[...]).astype(cdt)
    up1 = (jnp.dot(x1, wup1_ref[...], preferred_element_type=f32)
           + bup_ref[...]).astype(cdt)

    # ---- F.pad(up, [pad_left, pad_right]) in polyphase form: drop the two
    # deconv phases straight into the even-row band PE and odd-row band PO of
    # the length-L2 sequence (no in-kernel interleave, no scratch).
    a, odd = pad_left // 2, pad_left % 2
    pe_lead, pe_src = (a + 1, up1) if odd else (a, up0)
    po_lead, po_src = (a, up0) if odd else (a, up1)

    def _place(lead, src):
        trail = L2h - lead - L1
        parts = []
        if lead > 0:
            parts.append(jnp.zeros((lead, cmid_p), cdt))
        parts.append(src)
        if trail > 0:
            parts.append(jnp.zeros((trail, cmid_p), cdt))
        return parts[0] if len(parts) == 1 else jnp.concatenate(parts, axis=0)

    pe = _place(pe_lead, pe_src)                                  # (L2h, Cmid_p)
    po = _place(po_lead, po_src)

    # ---- torch.cat([x2, up], dim=channel), still split by row parity.
    xe = jnp.concatenate([x2_ref[0, 0, :, :], pe], axis=-1)       # (L2h, Ccat_p)
    xo = jnp.concatenate([x2_ref[0, 1, :, :], po], axis=-1)

    # ---- Conv1d(k=3, padding=1) + ReLU, polyphase:
    #   y[2m]   = X[2m-1] Wc0 + X[2m]   Wc1 + X[2m+1] Wc2
    #           = XO[m-1] Wc0 + XE[m]   Wc1 + XO[m]   Wc2
    #   y[2m+1] = XE[m]   Wc0 + XO[m]   Wc1 + XE[m+1] Wc2
    ccat_p = xe.shape[-1]
    zrow = jnp.zeros((1, ccat_p), cdt)
    xo_m1 = jnp.concatenate([zrow, xo[:-1, :]], axis=0)           # XO[m-1]
    xe_p1 = jnp.concatenate([xe[1:, :], zrow], axis=0)            # XE[m+1]

    wc0, wc1, wc2 = wc0_ref[...], wc1_ref[...], wc2_ref[...]
    ye = (jnp.dot(xo_m1, wc0, preferred_element_type=f32)
          + jnp.dot(xe, wc1, preferred_element_type=f32)
          + jnp.dot(xo, wc2, preferred_element_type=f32)
          + bc_ref[...])
    yo = (jnp.dot(xe, wc0, preferred_element_type=f32)
          + jnp.dot(xo, wc1, preferred_element_type=f32)
          + jnp.dot(xe_p1, wc2, preferred_element_type=f32)
          + bc_ref[...])

    o_ref[0, 0, :, :] = jnp.maximum(ye, 0.0).astype(o_ref.dtype)
    o_ref[0, 1, :, :] = jnp.maximum(yo, 0.0).astype(o_ref.dtype)


def up_forward(x1_ncl, x2_ncl, params, *, compute_dtype=jnp.bfloat16):
    """x1_ncl: (N, in_ch, L1), x2_ncl: (N, in_ch//2, L2) -> (N, out_ch, L2)."""
    N, cin, L1 = x1_ncl.shape
    N2, cmid, L2 = x2_ncl.shape
    assert N2 == N and cmid * 2 == cin
    cout = params["wc"].shape[0]
    diff = L2 - 2 * L1
    assert diff >= 0, "skip connection must be at least as long as the upsample"
    pad_left = diff // 2

    # Lane-dense channel padding (multiples of 128) -> unmasked loads/stores and
    # a fully occupied MXU lane dimension.
    cin_p = _round_up(cin, _LANE)
    cmid_p = _round_up(cmid, _LANE)
    ccat_p = 2 * cmid_p          # conv input channels: [x2 band | upsample band]
    cout_p = _round_up(cout, _LANE)
    L2e = _round_up(L2, 2)       # even length for the even/odd (polyphase) split
    L2h = L2e // 2

    cdt = compute_dtype
    f32 = jnp.float32

    # Activations: NCL -> NLC, pad channels (and length to even), cast to bf16.
    x1 = jnp.transpose(x1_ncl, (0, 2, 1))
    x1 = jnp.pad(x1, ((0, 0), (0, 0), (0, cin_p - cin))).astype(cdt)
    x2 = jnp.transpose(x2_ncl, (0, 2, 1))
    x2 = jnp.pad(x2, ((0, 0), (0, L2e - L2), (0, cmid_p - cmid))).astype(cdt)
    # De-interleave the skip connection into even / odd rows (cheap XLA layout
    # plumbing; keeps the kernel free of strided stores / register interleaves).
    x2 = jnp.stack([x2[:, 0::2, :], x2[:, 1::2, :]], axis=1)  # (N, 2, L2h, Cmid_p)

    # Weights (PyTorch layouts), zero-padded + transposed for channels-last matmuls.
    wup = params["wup"]                                        # (Cin, Cmid, 2)
    wup0 = jnp.pad(wup[:, :, 0], ((0, cin_p - cin), (0, cmid_p - cmid))).astype(cdt)
    wup1 = jnp.pad(wup[:, :, 1], ((0, cin_p - cin), (0, cmid_p - cmid))).astype(cdt)
    bup = jnp.pad(params["bup"], (0, cmid_p - cmid)).reshape(1, cmid_p).astype(f32)

    wc = params["wc"]                                          # (Cout, Cin, 3)

    def _pack_wc(k):
        w = jnp.zeros((ccat_p, cout_p), f32)
        w = w.at[:cmid, :cout].set(wc[:, :cmid, k].T)               # x2 band
        w = w.at[cmid_p:cmid_p + cmid, :cout].set(wc[:, cmid:, k].T)  # up band
        return w.astype(cdt)

    wc0, wc1, wc2 = _pack_wc(0), _pack_wc(1), _pack_wc(2)
    bc = jnp.pad(params["bc"], (0, cout_p - cout)).reshape(1, cout_p).astype(f32)

    kernel = functools.partial(_up_kernel, pad_left=pad_left)

    out = pl.pallas_call(
        kernel,
        out_shape=jax.ShapeDtypeStruct((N, 2, L2h, cout_p), f32),
        grid=(N,),
        in_specs=[
            pl.BlockSpec((1, L1, cin_p), lambda n: (n, 0, 0)),
            pl.BlockSpec((1, 2, L2h, cmid_p), lambda n: (n, 0, 0, 0)),
            pl.BlockSpec((cin_p, cmid_p), lambda n: (0, 0)),
            pl.BlockSpec((cin_p, cmid_p), lambda n: (0, 0)),
            pl.BlockSpec((1, cmid_p), lambda n: (0, 0)),
            pl.BlockSpec((ccat_p, cout_p), lambda n: (0, 0)),
            pl.BlockSpec((ccat_p, cout_p), lambda n: (0, 0)),
            pl.BlockSpec((ccat_p, cout_p), lambda n: (0, 0)),
            pl.BlockSpec((1, cout_p), lambda n: (0, 0)),
        ],
        out_specs=pl.BlockSpec((1, 2, L2h, cout_p), lambda n: (n, 0, 0, 0)),
        compiler_params=pltpu.CompilerParams(
            dimension_semantics=("parallel",)),
    )(x1, x2, wup0, wup1, bup, wc0, wc1, wc2, bc)

    # Re-interleave even/odd rows (XLA side), drop padding, back to (N, C, L).
    out = jnp.transpose(out, (0, 2, 1, 3)).reshape(N, L2e, cout_p)
    out = out[:, :L2, :cout]
    return jnp.transpose(out, (0, 2, 1))


def up_reference(x1, x2, params, compute_dtype=jnp.bfloat16):
    """Pure-JAX reference with PyTorch semantics (NCL layout).

    Mirrors the kernel's numerics (bf16 operands, f32 accumulation, bf16
    intermediate between the two convs) so the comparison is tight; the true
    f32 PyTorch module differs from both by O(1e-2) bf16 quantization.
    """
    hi = lax.Precision.HIGHEST
    f32 = jnp.float32
    cdt = compute_dtype
    # ConvTranspose1d(k=2, s=2): out[:, :, 2l+k] = sum_ci x[:, ci, l] * W[ci, :, k]
    up = jnp.einsum("ncl,cok->nolk", x1.astype(cdt), params["wup"].astype(cdt),
                    precision=hi, preferred_element_type=f32)
    N, cmid, L1, K = up.shape
    up = up.reshape(N, cmid, L1 * K) + params["bup"][None, :, None]
    up = up.astype(cdt)
    diff = x2.shape[2] - up.shape[2]
    up = jnp.pad(up, ((0, 0), (0, 0), (diff // 2, diff - diff // 2)))
    x = jnp.concatenate([x2.astype(cdt), up], axis=1)
    xp = jnp.pad(x, ((0, 0), (0, 0), (1, 1)))
    L2 = x2.shape[2]
    wc = params["wc"].astype(cdt)
    y = sum(jnp.einsum("ncl,oc->nol", xp[:, :, k:k + L2], wc[:, :, k],
                       precision=hi, preferred_element_type=f32)
            for k in range(3))
    return jnp.maximum(y + params["bc"][None, :, None], 0.0)


def init_params(key, in_ch, out_ch):
    cmid = in_ch // 2
    k1, k2, k3, k4 = jax.random.split(key, 4)
    return {
        "wup": 0.2 * jax.random.normal(k1, (in_ch, cmid, 2), jnp.float32),
        "bup": 0.1 * jax.random.normal(k2, (cmid,), jnp.float32),
        "wc": 0.2 * jax.random.normal(k3, (out_ch, in_ch, 3), jnp.float32),
        "bc": 0.1 * jax.random.normal(k4, (out_ch,), jnp.float32),
    }


if __name__ == "__main__":
    key = jax.random.PRNGKey(0)
    kx1, kx2, kp = jax.random.split(key, 3)

    N, in_ch, out_ch = 2, 8, 8
    L1, L2 = 7, 16                       # diff = 2 -> F.pad(up, [1, 1])

    x1 = jax.random.normal(kx1, (N, in_ch, L1), jnp.float32)
    x2 = jax.random.normal(kx2, (N, in_ch // 2, L2), jnp.float32)
    params = init_params(kp, in_ch, out_ch)

    out = jax.block_until_ready(up_forward(x1, x2, params))
    ref = up_reference(x1, x2, params)

    assert out.shape == (N, out_ch, L2), out.shape
    assert jnp.allclose(out, ref, atol=2e-3, rtol=2e-3), \
        float(jnp.max(jnp.abs(out - ref)))
    print("KERNEL_OK")
</pallas_src>

<mosaic_0001>
module attributes {stable_mosaic.version = 11 : i64} {
  func.func @_up_kernel(%arg0: i32, %arg1: memref<1x7x128xbf16, #tpu.memory_space<vmem>>, %arg2: memref<1x2x8x128xbf16, #tpu.memory_space<vmem>>, %arg3: memref<128x128xbf16, #tpu.memory_space<vmem>>, %arg4: memref<128x128xbf16, #tpu.memory_space<vmem>>, %arg5: memref<1x128xf32, #tpu.memory_space<vmem>>, %arg6: memref<256x128xbf16, #tpu.memory_space<vmem>>, %arg7: memref<256x128xbf16, #tpu.memory_space<vmem>>, %arg8: memref<256x128xbf16, #tpu.memory_space<vmem>>, %arg9: memref<1x128xf32, #tpu.memory_space<vmem>>, %arg10: memref<1x2x8x128xf32, #tpu.memory_space<vmem>>) attributes {dimension_semantics = [#tpu.dimension_semantics<parallel>], iteration_bounds = array<i64: 2>, scalar_prefetch = 0 : i64, scratch_operands = 0 : i64, tpu.core_type = #tpu.core_type<tc>, window_params = [{transform_indices = @transform_0, window_bounds = array<i64: 1, 7, 128>}, {transform_indices = @transform_1, window_bounds = array<i64: 1, 2, 8, 128>}, {pipeline_mode = #tpu.pipeline_mode<synchronous>, transform_indices = @transform_2, window_bounds = array<i64: 128, 128>}, {pipeline_mode = #tpu.pipeline_mode<synchronous>, transform_indices = @transform_3, window_bounds = array<i64: 128, 128>}, {pipeline_mode = #tpu.pipeline_mode<synchronous>, transform_indices = @transform_4, window_bounds = array<i64: 1, 128>}, {pipeline_mode = #tpu.pipeline_mode<synchronous>, transform_indices = @transform_5, window_bounds = array<i64: 256, 128>}, {pipeline_mode = #tpu.pipeline_mode<synchronous>, transform_indices = @transform_6, window_bounds = array<i64: 256, 128>}, {pipeline_mode = #tpu.pipeline_mode<synchronous>, transform_indices = @transform_7, window_bounds = array<i64: 256, 128>}, {pipeline_mode = #tpu.pipeline_mode<synchronous>, transform_indices = @transform_8, window_bounds = array<i64: 1, 128>}, {transform_indices = @transform_9, window_bounds = array<i64: 1, 2, 8, 128>}]} {
    %c0 = arith.constant 0 : index
    %c0_0 = arith.constant 0 : index
    %c0_1 = arith.constant 0 : index
    %0 = vector.load %arg1[%c0, %c0_0, %c0_1] : memref<1x7x128xbf16, #tpu.memory_space<vmem>>, vector<1x7x128xbf16>
    %1 = vector.shape_cast %0 : vector<1x7x128xbf16> to vector<7x128xbf16>
    %c0_2 = arith.constant 0 : index
    %c0_3 = arith.constant 0 : index
    %2 = vector.load %arg3[%c0_2, %c0_3] : memref<128x128xbf16, #tpu.memory_space<vmem>>, vector<128x128xbf16>
    %cst = arith.constant dense<0.000000e+00> : vector<7x128xf32>
    %3 = tpu.matmul %1, %2, %cst {dimension_numbers = #tpu.dot_dimension_numbers<[1], [0], [0], [1], [0, 0, 1, 1], [], []>} : vector<7x128xbf16>, vector<128x128xbf16>, vector<7x128xf32> -> vector<7x128xf32>
    %c0_4 = arith.constant 0 : index
    %c0_5 = arith.constant 0 : index
    %4 = vector.load %arg5[%c0_4, %c0_5] : memref<1x128xf32, #tpu.memory_space<vmem>>, vector<1x128xf32>
    %5 = vector.broadcast %4 : vector<1x128xf32> to vector<7x128xf32>
    %6 = arith.addf %3, %5 : vector<7x128xf32>
    %7 = arith.truncf %6 : vector<7x128xf32> to vector<7x128xbf16>
    %c0_6 = arith.constant 0 : index
    %c0_7 = arith.constant 0 : index
    %8 = vector.load %arg4[%c0_6, %c0_7] : memref<128x128xbf16, #tpu.memory_space<vmem>>, vector<128x128xbf16>
    %cst_8 = arith.constant dense<0.000000e+00> : vector<7x128xf32>
    %9 = tpu.matmul %1, %8, %cst_8 {dimension_numbers = #tpu.dot_dimension_numbers<[1], [0], [0], [1], [0, 0, 1, 1], [], []>} : vector<7x128xbf16>, vector<128x128xbf16>, vector<7x128xf32> -> vector<7x128xf32>
    %c0_9 = arith.constant 0 : index
    %c0_10 = arith.constant 0 : index
    %10 = vector.load %arg5[%c0_9, %c0_10] : memref<1x128xf32, #tpu.memory_space<vmem>>, vector<1x128xf32>
    %11 = vector.broadcast %10 : vector<1x128xf32> to vector<7x128xf32>
    %12 = arith.addf %9, %11 : vector<7x128xf32>
    %13 = arith.truncf %12 : vector<7x128xf32> to vector<7x128xbf16>
    %cst_11 = arith.constant 0.000000e+00 : bf16
    %14 = vector.broadcast %cst_11 : bf16 to vector<1x128xbf16>
    %15 = tpu.concatenate %14, %13 in 0 : vector<1x128xbf16>, vector<7x128xbf16> -> vector<8x128xbf16>
    %cst_12 = arith.constant 0.000000e+00 : bf16
    %16 = vector.broadcast %cst_12 : bf16 to vector<1x128xbf16>
    %17 = tpu.concatenate %7, %16 in 0 : vector<7x128xbf16>, vector<1x128xbf16> -> vector<8x128xbf16>
    %c0_13 = arith.constant 0 : index
    %c0_14 = arith.constant 0 : index
    %c0_15 = arith.constant 0 : index
    %c0_16 = arith.constant 0 : index
    %18 = vector.load %arg2[%c0_13, %c0_14, %c0_15, %c0_16] : memref<1x2x8x128xbf16, #tpu.memory_space<vmem>>, vector<1x1x8x128xbf16>
    %19 = vector.shape_cast %18 : vector<1x1x8x128xbf16> to vector<8x128xbf16>
    %20 = tpu.concatenate %19, %15 in 1 : vector<8x128xbf16>, vector<8x128xbf16> -> vector<8x256xbf16>
    %c0_17 = arith.constant 0 : index
    %c1 = arith.constant 1 : index
    %c0_18 = arith.constant 0 : index
    %c0_19 = arith.constant 0 : index
    %21 = vector.load %arg2[%c0_17, %c1, %c0_18, %c0_19] : memref<1x2x8x128xbf16, #tpu.memory_space<vmem>>, vector<1x1x8x128xbf16>
    %22 = vector.shape_cast %21 : vector<1x1x8x128xbf16> to vector<8x128xbf16>
    %23 = tpu.concatenate %22, %17 in 1 : vector<8x128xbf16>, vector<8x128xbf16> -> vector<8x256xbf16>
    %cst_20 = arith.constant 0.000000e+00 : bf16
    %24 = vector.broadcast %cst_20 : bf16 to vector<1x256xbf16>
    %25 = vector.extract_strided_slice %23 {offsets = [0, 0], sizes = [7, 256], strides = [1, 1]} : vector<8x256xbf16> to vector<7x256xbf16>
    %26 = tpu.concatenate %24, %25 in 0 : vector<1x256xbf16>, vector<7x256xbf16> -> vector<8x256xbf16>
    %27 = vector.extract_strided_slice %20 {offsets = [1, 0], sizes = [7, 256], strides = [1, 1]} : vector<8x256xbf16> to vector<7x256xbf16>
    %28 = tpu.concatenate %27, %24 in 0 : vector<7x256xbf16>, vector<1x256xbf16> -> vector<8x256xbf16>
    %c0_21 = arith.constant 0 : index
    %c0_22 = arith.constant 0 : index
    %29 = vector.load %arg6[%c0_21, %c0_22] : memref<256x128xbf16, #tpu.memory_space<vmem>>, vector<256x128xbf16>
    %c0_23 = arith.constant 0 : index
    %c0_24 = arith.constant 0 : index
    %30 = vector.load %arg7[%c0_23, %c0_24] : memref<256x128xbf16, #tpu.memory_space<vmem>>, vector<256x128xbf16>
    %c0_25 = arith.constant 0 : index
    %c0_26 = arith.constant 0 : index
    %31 = vector.load %arg8[%c0_25, %c0_26] : memref<256x128xbf16, #tpu.memory_space<vmem>>, vector<256x128xbf16>
    %cst_27 = arith.constant dense<0.000000e+00> : vector<8x128xf32>
    %32 = tpu.matmul %26, %29, %cst_27 {dimension_numbers = #tpu.dot_dimension_numbers<[1], [0], [0], [1], [0, 0, 1, 1], [], []>} : vector<8x256xbf16>, vector<256x128xbf16>, vector<8x128xf32> -> vector<8x128xf32>
    %cst_28 = arith.constant dense<0.000000e+00> : vector<8x128xf32>
    %33 = tpu.matmul %20, %30, %cst_28 {dimension_numbers = #tpu.dot_dimension_numbers<[1], [0], [0], [1], [0, 0, 1, 1], [], []>} : vector<8x256xbf16>, vector<256x128xbf16>, vector<8x128xf32> -> vector<8x128xf32>
    %34 = arith.addf %32, %33 : vector<8x128xf32>
    %cst_29 = arith.constant dense<0.000000e+00> : vector<8x128xf32>
    %35 = tpu.matmul %23, %31, %cst_29 {dimension_numbers = #tpu.dot_dimension_numbers<[1], [0], [0], [1], [0, 0, 1, 1], [], []>} : vector<8x256xbf16>, vector<256x128xbf16>, vector<8x128xf32> -> vector<8x128xf32>
    %36 = arith.addf %34, %35 : vector<8x128xf32>
    %c0_30 = arith.constant 0 : index
    %c0_31 = arith.constant 0 : index
    %37 = vector.load %arg9[%c0_30, %c0_31] : memref<1x128xf32, #tpu.memory_space<vmem>>, vector<1x128xf32>
    %38 = vector.broadcast %37 : vector<1x128xf32> to vector<8x128xf32>
    %39 = arith.addf %36, %38 : vector<8x128xf32>
    %cst_32 = arith.constant dense<0.000000e+00> : vector<8x128xf32>
    %40 = tpu.matmul %20, %29, %cst_32 {dimension_numbers = #tpu.dot_dimension_numbers<[1], [0], [0], [1], [0, 0, 1, 1], [], []>} : vector<8x256xbf16>, vector<256x128xbf16>, vector<8x128xf32> -> vector<8x128xf32>
    %cst_33 = arith.constant dense<0.000000e+00> : vector<8x128xf32>
    %41 = tpu.matmul %23, %30, %cst_33 {dimension_numbers = #tpu.dot_dimension_numbers<[1], [0], [0], [1], [0, 0, 1, 1], [], []>} : vector<8x256xbf16>, vector<256x128xbf16>, vector<8x128xf32> -> vector<8x128xf32>
    %42 = arith.addf %40, %41 : vector<8x128xf32>
    %cst_34 = arith.constant dense<0.000000e+00> : vector<8x128xf32>
    %43 = tpu.matmul %28, %31, %cst_34 {dimension_numbers = #tpu.dot_dimension_numbers<[1], [0], [0], [1], [0, 0, 1, 1], [], []>} : vector<8x256xbf16>, vector<256x128xbf16>, vector<8x128xf32> -> vector<8x128xf32>
    %44 = arith.addf %42, %43 : vector<8x128xf32>
    %c0_35 = arith.constant 0 : index
    %c0_36 = arith.constant 0 : index
    %45 = vector.load %arg9[%c0_35, %c0_36] : memref<1x128xf32, #tpu.memory_space<vmem>>, vector<1x128xf32>
    %46 = vector.broadcast %45 : vector<1x128xf32> to vector<8x128xf32>
    %47 = arith.addf %44, %46 : vector<8x128xf32>
    %cst_37 = arith.constant 0.000000e+00 : f32
    %48 = vector.broadcast %cst_37 : f32 to vector<8x128xf32>
    %49 = arith.maximumf %39, %48 : vector<8x128xf32>
    %c0_38 = arith.constant 0 : index
    %c0_39 = arith.constant 0 : index
    %c0_40 = arith.constant 0 : index
    %c0_41 = arith.constant 0 : index
    %50 = vector.load %arg10[%c0_38, %c0_39, %c0_40, %c0_41] : memref<1x2x8x128xf32, #tpu.memory_space<vmem>>, vector<1x1x8x128xf32>
    %51 = vector.shape_cast %50 : vector<1x1x8x128xf32> to vector<8x128xf32>
    %52 = vector.shape_cast %49 : vector<8x128xf32> to vector<1x1x8x128xf32>
    tpu.vector_store %arg10[%c0_38, %c0_39, %c0_40, %c0_41], %52 {strides = array<i32>} : memref<1x2x8x128xf32, #tpu.memory_space<vmem>>, vector<1x1x8x128xf32>,
    %cst_42 = arith.constant 0.000000e+00 : f32
    %53 = vector.broadcast %cst_42 : f32 to vector<8x128xf32>
    %54 = arith.maximumf %47, %53 : vector<8x128xf32>
    %c0_43 = arith.constant 0 : index
    %c1_44 = arith.constant 1 : index
    %c0_45 = arith.constant 0 : index
    %c0_46 = arith.constant 0 : index
    %55 = vector.load %arg10[%c0_43, %c1_44, %c0_45, %c0_46] : memref<1x2x8x128xf32, #tpu.memory_space<vmem>>, vector<1x1x8x128xf32>
    %56 = vector.shape_cast %55 : vector<1x1x8x128xf32> to vector<8x128xf32>
    %57 = vector.shape_cast %54 : vector<8x128xf32> to vector<1x1x8x128xf32>
    tpu.vector_store %arg10[%c0_43, %c1_44, %c0_45, %c0_46], %57 {strides = array<i32>} : memref<1x2x8x128xf32, #tpu.memory_space<vmem>>, vector<1x1x8x128xf32>,
    return
  }
  func.func @transform_0(%arg0: i32) -> (i32, i32, i32) {
    %c0_i32 = arith.constant 0 : i32
    %c0_i32_0 = arith.constant 0 : i32
    %c0_i32_1 = arith.constant 0 : i32
    return %arg0, %c0_i32, %c0_i32_0 : i32, i32, i32
  }
  func.func @transform_1(%arg0: i32) -> (i32, i32, i32, i32) {
    %c0_i32 = arith.constant 0 : i32
    %c0_i32_0 = arith.constant 0 : i32
    %c0_i32_1 = arith.constant 0 : i32
    %c0_i32_2 = arith.constant 0 : i32
    return %arg0, %c0_i32, %c0_i32_0, %c0_i32_1 : i32, i32, i32, i32
  }
  func.func @transform_2(%arg0: i32) -> (i32, i32) {
    %c0_i32 = arith.constant 0 : i32
    %c0_i32_0 = arith.constant 0 : i32
    %c0_i32_1 = arith.constant 0 : i32
    return %c0_i32, %c0_i32_0 : i32, i32
  }
  func.func @transform_3(%arg0: i32) -> (i32, i32) {
    %c0_i32 = arith.constant 0 : i32
    %c0_i32_0 = arith.constant 0 : i32
    %c0_i32_1 = arith.constant 0 : i32
    return %c0_i32, %c0_i32_0 : i32, i32
  }
  func.func @transform_4(%arg0: i32) -> (i32, i32) {
    %c0_i32 = arith.constant 0 : i32
    %c0_i32_0 = arith.constant 0 : i32
    %c0_i32_1 = arith.constant 0 : i32
    return %c0_i32, %c0_i32_0 : i32, i32
  }
  func.func @transform_5(%arg0: i32) -> (i32, i32) {
    %c0_i32 = arith.constant 0 : i32
    %c0_i32_0 = arith.constant 0 : i32
    %c0_i32_1 = arith.constant 0 : i32
    return %c0_i32, %c0_i32_0 : i32, i32
  }
  func.func @transform_6(%arg0: i32) -> (i32, i32) {
    %c0_i32 = arith.constant 0 : i32
    %c0_i32_0 = arith.constant 0 : i32
    %c0_i32_1 = arith.constant 0 : i32
    return %c0_i32, %c0_i32_0 : i32, i32
  }
  func.func @transform_7(%arg0: i32) -> (i32, i32) {
    %c0_i32 = arith.constant 0 : i32
    %c0_i32_0 = arith.constant 0 : i32
    %c0_i32_1 = arith.constant 0 : i32
    return %c0_i32, %c0_i32_0 : i32, i32
  }
  func.func @transform_8(%arg0: i32) -> (i32, i32) {
    %c0_i32 = arith.constant 0 : i32
    %c0_i32_0 = arith.constant 0 : i32
    %c0_i32_1 = arith.constant 0 : i32
    return %c0_i32, %c0_i32_0 : i32, i32
  }
  func.func @transform_9(%arg0: i32) -> (i32, i32, i32, i32) {
    %c0_i32 = arith.constant 0 : i32
    %c0_i32_0 = arith.constant 0 : i32
    %c0_i32_1 = arith.constant 0 : i32
    %c0_i32_2 = arith.constant 0 : i32
    return %arg0, %c0_i32, %c0_i32_0, %c0_i32_1 : i32, i32, i32, i32
  }
}

</mosaic_0001>

<bundles_post_ra>
// kernel: tpu_custom_call.1
= control target key start
LH: loop header
LB: loop body
LE: loop exit
PB: predicated region body
PF: predicated region fallthrough
CT: control target
= control target key end

     0   :  { %s2546_s0 = inlined_call_operand.vmem [shape: bf16[2,7,128], index: 0, kind: input, shape index: {}]   ;;  %s2547_s1 = inlined_call_operand.vmem [shape: bf16[2,2,8,128], index: 1, kind: input, shape index: {}]   ;;  %s2548_s2 = inlined_call_operand.hbm [shape: bf16[128,128], index: 2, kind: input, shape index: {}]   ;;  %s2549_s3 = inlined_call_operand.hbm [shape: bf16[128,128], index: 3, kind: input, shape index: {}]   ;;  %s2550_s4 = inlined_call_operand.vmem [shape: f32[1,128], index: 4, kind: input, shape index: {}]   ;;  %s2551_s5 = inlined_call_operand.hbm [shape: bf16[256,128], index: 5, kind: input, shape index: {}]   ;;  %s2552_s6 = inlined_call_operand.hbm [shape: bf16[256,128], index: 6, kind: input, shape index: {}]   ;;  %s2553_s7 = inlined_call_operand.hbm [shape: bf16[256,128], index: 7, kind: input, shape index: {}]   ;;  %s2554_s8 = inlined_call_operand.vmem [shape: f32[1,128], index: 8, kind: input, shape index: {}]   ;;  %s2555_s9 = inlined_call_operand.hbm [shape: f32[2,2,8,128], index: 9, kind: output, shape index: {}]  }
   0x1   :  { %2557 = sst [smem:[#allocation17_spill]] %s2549_s3 }
   0x2   :  { %14 = vsyncpa [#allocation3], 0 }
   0x3   :  { %15 = vsyncpa [#allocation6], 0 }
   0x4   :  { %16 = vsyncpa [#allocation9], 0 }
   0x5   :  { %17 = vsyncpa [#allocation4], 0 }
   0x6   :  { %19 = vsyncpa [#allocation4 + $0x1], 0  ;;  %s2182_s30 = smov 0   ;;  %s2184_s10 = smov 0  }
   0x7   :  { %s2186_s11 = smov 0   ;;  %s2188_s12 = smov 0  }
   0x8 LB: > { %s2203_s13 = sadd.s32 4294967295, %s2118_s12   ;;  %s1473_s14 = sadd.s32 4294967294, %s2118_s12   ;;  %s2118_s12 = sphi %s2188_s12, %s2577_s12   ;;  %s2114_s11 = sphi %s2186_s11, %s2576_s11   ;;  %s2110_s10 = sphi %s2184_s10, %s2575_s10   ;;  %s2106_s30 = sphi %s2182_s30, %s2574_s30  }
   0x9   : > { %s2207_s15 = sadd.s32 1, %s2118_s12   ;;  %s231_s16 = sadd.s32 1, %s2114_s11 }
   0xa   : > { %s228_s17 = ssub.s32 %s2118_s12, %s2207_s15  ;;  %p241_p0 = scmp.ne.s32.totalorder %s2114_s11, %s2110_s10 }
   0xb   : > { %p229_p1 = scmp.eq.s32.totalorder %s228_s17, 0  ;;  %p242_p2 = scmp.eq.s32.totalorder %s2203_s13, 1 }
   0xc   : > { %p247_p3 = scmp.ne.s32.totalorder %s2110_s10, %s2106_s30  ;;  %p248_p4 = scmp.eq.s32.totalorder %s1473_s14, 1 }
   0xd   : > { %s2218_s18 = scalar_select %p229_p1, %s2114_s11, %s231_s16  }
   0xe   : > { %p2220_p5 = por %p242_p2, %p241_p0  ;;  %p2224_p6 = por %p248_p4, %p247_p3 }
   0xf   : > { %2558 = sst [smem:[#allocation16_spill]] %s2218_s18  ;;  %p1474_p7 = scmp.ge.s32.totalorder %s2118_s12, 1 }
  0x10   : > { %p255_p8 = scmp.lt.s32.totalorder %s2118_s12, 3  ;;  %p2556_p9 = scmp.eq.s32.totalorder %s2203_s13, 0 }
  0x11   : > { %s2120_s22 = smov [#allocation5]   ;;  %s2121_s25 = smov [#allocation8]  }
  0x12   : > { %p2231_p10 = pnand %p1474_p7, %p255_p8  ;;  %s280_s23 = sshll.u32 %s2120_s22, 4  ;;  %s281_s23 = int_to_ptr.vmem [resolvable:$true] %s280_s23 }
  0x13   : > { %s309_s26 = sshll.u32 %s2121_s25, 4  ;;  %s2122_s27 = smov [#allocation2]   ;;  %s310_s26 = int_to_ptr.vmem [resolvable:$true] %s309_s26 }
  0x14   : > { %p1778_p11 = pneg %p2231_p10  ;;  %s267_s28 = sshll.u32 %s2122_s27, 4  ;;  %s268_s28 = int_to_ptr.vmem [resolvable:$true] %s267_s28 }
  0x15   : > { %s1927_s14 = scalar_lea.vmem %s281_s23, 1024  ;;  %p1935_p3 = scmp.lt.s32.totalorder %s281_s23, %s281_s23 }
  0x16   : > { %p2239_p12 = pnand %p2556_p9, %p1778_p11  ;;  %p1928_p0 = scmp.ne.s32.totalorder %s281_s23, %s1927_s14 }
  0x17   : > { %p1936_p4 = scmp.lt.s32.totalorder %s1927_s14, %s1927_s14 }
  0x18   : > { %p2245_p13 = pneg %p2239_p12 }
  0x19   : > { %p1937_p7 = por %p1936_p4, %p1935_p3 }
  0x1a   : > { %p1930_p1 = pnand %p1928_p0, %p2245_p13 }
  0x1c   : > { %p1931_p2 = pneg %p1930_p1 }
  0x1e   : > { %p1938_p8 = pnand %p1937_p7, %p1931_p2 }
  0x20   : > { %1941 = shalt.err (!%p1938_p8)
}
  0x21   : > { %s2123_s16 = smov 64   ;;  %s2124_s17 = smov 4  }
  0x22   : > { %s2564_s3 = sld [smem:[#allocation17_spill]]  ;;  %s1953_s27 = scalar_lea.vmem %s310_s26, 2048 }
  0x23   : > { %p1954_p11 = scmp.ne.s32.totalorder %s310_s26, %s1953_s27  ;;  %p1961_p3 = scmp.lt.s32.totalorder %s310_s26, %s310_s26 }
  0x24   : > { %p1962_p2 = scmp.lt.s32.totalorder %s1953_s27, %s1953_s27 }
  0x25   : > { %p1956_p0 = pnand %p1954_p11, %p2245_p13 }
  0x26   : > { %p1963_p4 = por %p1962_p2, %p1961_p3 }
  0x27   : > { %p1957_p1 = pneg %p1956_p0 }
  0x28   : > { %1784 = dma.hbm_to_vmem [thread:$0]  (!%p2239_p12), %s2564_s3, 1024, %s281_s23, [#allocation6], %s2123_s16, %s2123_s16, %s2124_s17  }
  0x29   : > { %p1964_p7 = pnand %p1963_p4, %p1957_p1 }
  0x2b   : > { %1967 = shalt.err (!%p1964_p7)
}
  0x2c   : > { %1790 = dma.hbm_to_vmem [thread:$0]  (!%p2239_p12), %s2552_s6, 2048, %s310_s26, [#allocation9], %s2123_s16, %s2123_s16, %s2124_s17  }
  0x2d   : > { %s1979_s23 = scalar_lea.vmem %s268_s28, 1024  ;;  %p1987_p9 = scmp.lt.s32.totalorder %s268_s28, %s268_s28 }
  0x2e   : > { %p1980_p8 = scmp.ne.s32.totalorder %s268_s28, %s1979_s23  ;;  %p1988_p3 = scmp.lt.s32.totalorder %s1979_s23, %s1979_s23 }
  0x30   : > { %p1982_p11 = pnand %p1980_p8, %p2245_p13  ;;  %p1989_p1 = por %p1988_p3, %p1987_p9 }
  0x32   : > { %p1983_p0 = pneg %p1982_p11 }
  0x34   : > { %p1990_p2 = pnand %p1989_p1, %p1983_p0 }
  0x36   : > { %1993 = shalt.err (!%p1990_p2)
}
  0x37   : > { %1781 = dma.hbm_to_vmem [thread:$0]  (!%p2239_p12), %s2548_s2, 1024, %s268_s28, [#allocation3], %s2123_s16, %s2123_s16, %s2124_s17  }
  0x38   : > { %s2125_s26 = smov [#allocation7]   ;;  %s2126_s27 = smov [#allocation10]  }
  0x39   : > { %s296_s25 = sshll.u32 %s2125_s26, 4  ;;  %s322_s14 = sshll.u32 %s2126_s27, 4  ;;  %s297_s25 = int_to_ptr.vmem [resolvable:$true] %s296_s25  ;;  %s323_s14 = int_to_ptr.vmem [resolvable:$true] %s322_s14 }
  0x3a   : > { %s2005_s3 = scalar_lea.vmem %s297_s25, 2048  ;;  %p2013_p8 = scmp.lt.s32.totalorder %s297_s25, %s297_s25 }
  0x3b   : > { %p2006_p4 = scmp.ne.s32.totalorder %s297_s25, %s2005_s3  ;;  %p2014_p11 = scmp.lt.s32.totalorder %s2005_s3, %s2005_s3 }
  0x3d   : > { %p2008_p9 = pnand %p2006_p4, %p2245_p13  ;;  %p2015_p0 = por %p2014_p11, %p2013_p8 }
  0x3f   : > { %p2009_p7 = pneg %p2008_p9 }
  0x41   : > { %p2016_p3 = pnand %p2015_p0, %p2009_p7 }
  0x43   : > { %2019 = shalt.err (!%p2016_p3)
}
  0x44   : > { %1787 = dma.hbm_to_vmem [thread:$0]  (!%p2239_p12), %s2551_s5, 2048, %s297_s25, [#allocation6], %s2123_s16, %s2123_s16, %s2124_s17  }
  0x45   : > { %s2031_s22 = scalar_lea.vmem %s323_s14, 2048  ;;  %p2039_p9 = scmp.lt.s32.totalorder %s323_s14, %s323_s14 }
  0x46   : > { %p2032_p1 = scmp.ne.s32.totalorder %s323_s14, %s2031_s22  ;;  %p2040_p8 = scmp.lt.s32.totalorder %s2031_s22, %s2031_s22 }
  0x48   : > { %p2034_p2 = pnand %p2032_p1, %p2245_p13  ;;  %p2041_p7 = por %p2040_p8, %p2039_p9 }
  0x4a   : > { %p2035_p4 = pneg %p2034_p2 }
  0x4c   : > { %p2042_p11 = pnand %p2041_p7, %p2035_p4 }
  0x4e   : > { %2045 = shalt.err (!%p2042_p11)
}
  0x4f   : > { %1793 = dma.hbm_to_vmem [thread:$0]  (!%p2239_p12), %s2553_s7, 2048, %s323_s14, [#allocation9], %s2123_s16, %s2123_s16, %s2124_s17  }
  0x50   : > { %356 = sbr.rel (%p2231_p10) target bundleno = 615 (0x267), region = 56  ;;  %p2565_p13 = scmp.eq.s32.totalorder (!%p2231_p10), %s2203_s13, 0 }
  0x55   : > { %2089 = dma.done.wait (%p2565_p13), [#allocation3], 1024   ;;  %p2566_p0 = pmov %p2565_p13 }
  0x57   : > { %2091 = vsyncadd (%p2566_p0), [#allocation3], 4294966272  ;;  %p2567_p3 = pmov %p2566_p0 }
  0x58   : > { %p2568_p1 = pmov %p2566_p0 }
  0x59   : > { %2093 = dma.done.wait (%p2567_p3), [#allocation6], 3072  }
  0x5a   : > { %2095 = vsyncadd (%p2568_p1), [#allocation6], 4294964224  ;;  %p2569_p2 = pmov %p2566_p0 }
  0x5b   : > { %p2570_p12 = pmov %p2566_p0 }
  0x5c   : > { %2097 = dma.done.wait (%p2569_p2), [#allocation9], 4096  }
  0x5d   : > { %2099 = vsyncadd (%p2570_p12), [#allocation9], 4294963200  ;;  %v2127_v0 = vmov 0.0   ;;  %vm2128_vm0 = vmmov 0   ;;  %v1852_v1 = vld [vmem:[#allocation2 + $0x38] sm:$0xff]   ;;  %v1854_v3 = vld [vmem:[#allocation2 + $0x30] sm:$0xff]  }
  0x5e   : > { %1716 = vmatprep.subr.bf16.mxu0 %v2127_v0  ;;  %1736 = vmatprep.subr.bf16.mxu1 %v2127_v0  ;;  %v1853_v2 = vld [vmem:[#allocation5 + $0x38] sm:$0xff]   ;;  %v1855_v4 = vld [vmem:[#allocation5 + $0x30] sm:$0xff]   ;;  %v1856_v5 = vld [vmem:[#allocation2 + $0x28] sm:$0xff]   ;;  %p412_p10 = scmp.lt.s32.totalorder %s2203_s13, 1  ;;  %vm652_vm1 = vcmask 1043456   ;;  %vm648_vm4 = vcmask 1040384  }
  0x5f   : > { %1732 = vmatprep.mubr.msk.bf16.mxu0 %vm2128_vm0, %v2127_v0  ;;  %1752 = vmatprep.mubr.msk.bf16.mxu1 %vm2128_vm0, %v2127_v0  ;;  %v1857_v6 = vld [vmem:[#allocation5 + $0x28] sm:$0xff]   ;;  %v1858_v7 = vld [vmem:[#allocation2 + $0x20] sm:$0xff]   ;;  %v1860_v9 = vld [vmem:[#allocation2 + $0x18] sm:$0xff]   ;;  %vm653_vm2 = vsmask.f32 3328  ;;  %s409_s22 = sand.u32 1, %s2110_s10  }
  0x60   : > { %1717 = vmatpush3.bf16.msra.mxu0 %v1852_v1  ;;  %1737 = vmatpush3.bf16.msra.mxu1 %v1853_v2  ;;  %v1859_v8 = vld [vmem:[#allocation5 + $0x20] sm:$0xff]   ;;  %v1861_v10 = vld [vmem:[#allocation5 + $0x18] sm:$0xff]   ;;  %v1862_v11 = vld [vmem:[#allocation2 + $0x10] sm:$0xff]   ;;  %s2315_s21 = scalar_select %p412_p10, %s2203_s13, 1  ;;  %vm649_vm5 = vsmask.f32 256 }
  0x61   : > { %1718 = vmatprep.subr.bf16.mxu0 %v2127_v0  ;;  %1738 = vmatprep.subr.bf16.mxu1 %v2127_v0  ;;  %v1863_v12 = vld [vmem:[#allocation5 + $0x10] sm:$0xff]   ;;  %v1864_v13 = vld [vmem:[#allocation2 + $0x8] sm:$0xff]   ;;  %v1866_v15 = vld [vmem:[#allocation2] sm:$0xff]   ;;  %s1565_s16 = sshll.u32 %s2203_s13, 8  ;;  %s2506_s27 = scalar_lea.sflag [#allocation4], %s409_s22 }
  0x62   : > { %s1488_s24 = sshll.u32 %s2315_s21, 2  ;;  %v1865_v14 = vld [vmem:[#allocation5 + $0x8] sm:$0xff]   ;;  %v1867_v16 = vld [vmem:[#allocation5] sm:$0xff]   ;;  %v2321_v17 = vld [vmem:[#allocation8 + $0x78] sm:$0xff]   ;;  %s1564_s26 = sshll.u32 %s2315_s21, 3 }
  0x63   : > { %s415_s17 = scalar_lea.vmem %s2546_s0, %s1488_s24  ;;  %v2323_v19 = vld [vmem:[#allocation7 + $0x78] sm:$0xff]   ;;  %v2330_v22 = vld [vmem:[#allocation8 + $0x70] sm:$0xff]   ;;  %v2342_v26 = vld [vmem:[#allocation8 + $0x68] sm:$0xff]   ;;  %s2425_s14 = scalar_lea.vmem %s2547_s1, %s1564_s26 }
  0x64   : > { %1719 = vmatpush3.bf16.msra.mxu0 %v1854_v3  ;;  %1739 = vmatpush3.bf16.msra.mxu1 %v1855_v4  ;;  %v422_v18 = vld [vmem:[%s415_s17] sm:$0xf]  ;;  %v2325_v20 = vld [vmem:[#allocation8 + $0x38] sm:$0xff]   ;;  %v2333_v23 = vld [vmem:[#allocation7 + $0x70] sm:$0xff]   ;;  %s1487_s21 = sshll.u32 %s409_s22, 4  ;;  %s2502_s25 = scalar_lea.hbm %s2555_s9, %s1565_s16 }
  0x65   : > { %1720 = vmatprep.subr.bf16.mxu0 %v2127_v0  ;;  %1740 = vmatprep.subr.bf16.mxu1 %v2127_v0  ;;  %v2327_v21 = vld [vmem:[#allocation7 + $0x38] sm:$0xff]   ;;  %v2335_v24 = vld [vmem:[#allocation8 + $0x30] sm:$0xff]   ;;  %v2345_v27 = vld [vmem:[#allocation8 + $0x28] sm:$0xff]   ;;  %s411_s24 = scalar_lea.vmem [#allocation11], %s1487_s21  ;;  %s2129_s13 = smov [#allocation11]  }
  0x66   : > { %v2338_v25 = vld [vmem:[#allocation7 + $0x30] sm:$0xff]   ;;  %v2347_v28 = vld [vmem:[#allocation7 + $0x68] sm:$0xff]   ;;  %v2351_v30 = vld [vmem:[#allocation8 + $0x60] sm:$0xff]   ;;  %s1349_s29 = sshll.u32 %s411_s24, 4  ;;  %s2050_s28 = sshll.u32 %s2129_s13, 4  ;;  %s2497_s29 = int_to_ptr.vmem [resolvable:$true] %s1349_s29  ;;  %s2051_s28 = int_to_ptr.vmem [resolvable:$false] %s2050_s28 }
  0x67   : > { %v2349_v29 = vld [vmem:[#allocation7 + $0x28] sm:$0xff]   ;;  %v2354_v31 = vld [vmem:[#allocation7 + $0x60] sm:$0xff]   ;;  %v2363_v34 = vld [vmem:[#allocation8 + $0x58] sm:$0xff]   ;;  %s2052_s23 = scalar_lea.vmem %s2051_s28, 512  ;;  %p2053_p7 = scmp.lt.s32.totalorder %s2497_s29, %s2051_s28 }
  0x68   : > { %1721 = vmatpush3.bf16.msra.mxu0 %v1856_v5  ;;  %1741 = vmatpush3.bf16.msra.mxu1 %v1857_v6  ;;  %v2359_v32 = vld [vmem:[#allocation8 + $0x20] sm:$0xff]   ;;  %v2366_v35 = vld [vmem:[#allocation7 + $0x58] sm:$0xff]   ;;  %v2381_v38 = vld [vmem:[#allocation8 + $0x50] sm:$0xff]  }
  0x69   : > { %1722 = vmatprep.subr.bf16.mxu0 %v2127_v0  ;;  %1742 = vmatprep.subr.bf16.mxu1 %v2127_v0  ;;  %v2361_v33 = vld [vmem:[#allocation7 + $0x20] sm:$0xff]   ;;  %v2371_v36 = vld [vmem:[#allocation8 + $0x18] sm:$0xff]   ;;  %v2383_v39 = vld [vmem:[#allocation8 + $0x10] sm:$0xff]  }
  0x6a   : > { %v2373_v37 = vld [vmem:[#allocation7 + $0x18] sm:$0xff]   ;;  %v2385_v40 = vld [vmem:[#allocation7 + $0x50] sm:$0xff]   ;;  %v2393_v42 = vld [vmem:[#allocation8 + $0x48] sm:$0xff]  }
  0x6b   : > { %v2388_v41 = vld [vmem:[#allocation7 + $0x10] sm:$0xff]   ;;  %v2395_v43 = vld [vmem:[#allocation8 + $0x8] sm:$0xff]   ;;  %v2405_v46 = vld [vmem:[#allocation8 + $0x40] sm:$0xff]  }
  0x6c   : > { %1723 = vmatpush3.bf16.msra.mxu0 %v1858_v7  ;;  %1743 = vmatpush3.bf16.msra.mxu1 %v1859_v8  ;;  %v2397_v44 = vld [vmem:[#allocation7 + $0x48] sm:$0xff]   ;;  %v2407_v47 = vld [vmem:[#allocation8] sm:$0xff]   ;;  %v2417_v50 = vld [vmem:[#allocation10 + $0x78] sm:$0xff]  }
  0x6d   : > { %1724 = vmatprep.subr.bf16.mxu0 %v2127_v0  ;;  %1744 = vmatprep.subr.bf16.mxu1 %v2127_v0  ;;  %v2400_v45 = vld [vmem:[#allocation7 + $0x8] sm:$0xff]   ;;  %v2409_v48 = vld [vmem:[#allocation7 + $0x40] sm:$0xff]   ;;  %vm2434_vm3 = vmand %vm652_vm1, %vm653_vm2 }
  0x6e   : > { %v2412_v49 = vld [vmem:[#allocation7] sm:$0xff]   ;;  %vm650_vm6 = vmand %vm648_vm4, %vm649_vm5 }
  0x6f   : > { %v2428_v51 = vld [vmem:[%s2425_s14 + $0x4] sm:$0xf]  ;;  %v1491_v52 = vld [vmem:[%s2550_s4] ss:$0 sm:$0xff] }
  0x70   : > { %1725 = vmatpush3.bf16.msra.mxu0 %v1860_v9  ;;  %1745 = vmatpush3.bf16.msra.mxu1 %v1861_v10  ;;  %v660_v53 = vshrl.u32 %v2428_v51, 16  ;;  %v663_v63 = vshll.u32 %v2428_v51, 16 }
  0x71   : > { %1726 = vmatprep.subr.bf16.mxu0 %v2127_v0  ;;  %1746 = vmatprep.subr.bf16.mxu1 %v2127_v0 }
  0x72   : > { %v662_v62 = vrot.slane %v660_v53, 7  ;;  %v1902_v53 = vld [vmem:[#allocation10 + $0x70] sm:$0xff]  }
  0x74   : > { %1727 = vmatpush3.bf16.msra.mxu0 %v1862_v11  ;;  %1747 = vmatpush3.bf16.msra.mxu1 %v1863_v12  ;;  %v665_v9 = vor.u32 %v663_v63, %v662_v62 }
  0x75   : > { %1728 = vmatprep.subr.bf16.mxu0 %v2127_v0  ;;  %1748 = vmatprep.subr.bf16.mxu1 %v2127_v0 }
  0x78   : > { %1729 = vmatpush3.bf16.msra.mxu0 %v1864_v13  ;;  %1749 = vmatpush3.bf16.msra.mxu1 %v1865_v14 }
  0x79   : > { %1730 = vmatprep.subr.bf16.mxu0 %v2127_v0  ;;  %1750 = vmatprep.subr.bf16.mxu1 %v2127_v0 }
  0x7c   : > { %1731 = vmatpush3.bf16.msra.mxu0 %v1866_v15  ;;  %1751 = vmatpush3.bf16.msra.mxu1 %v1867_v16  ;;  %v2442_v15 = vld [vmem:[%s2425_s14] sm:$0xf]  ;;  %v2444_v16 = vld [vmem:[#allocation10 + $0x38] sm:$0xff]   ;;  %s2046_s14 = scalar_lea.vmem %s2497_s29, 256 }
  0x7d   : > { %1584 = vmatprep.subr.bf16.mxu0 %v2321_v17  ;;  %1606 = vmatprep.subr.bf16.mxu1 %v2323_v19  ;;  %p2047_p4 = scmp.ne.s32.totalorder %s2497_s29, %s2046_s14  ;;  %p2054_p11 = scmp.lt.s32.totalorder %s2052_s23, %s2046_s14 }
  0x7f   : > { %1733 = vmatmul.mubr.bf16.vlgmr.msra.gmra.mxu0 %v422_v18  ;;  %1753 = vmatmul.mubr.bf16.vlgmr.msra.gmra.mxu1 %v422_v18  ;;  %p2048_p9 = pnand %p2047_p4, %p2220_p5  ;;  %p2055_p13 = por %p2054_p11, %p2053_p7 }
  0x80   : > { %1585 = vmatpush3.bf16.msra.mxu0 %v2325_v20  ;;  %1607 = vmatpush3.bf16.msra.mxu1 %v2327_v21 }
  0x81   : > { %1586 = vmatprep.subr.bf16.mxu0 %v2330_v22  ;;  %1608 = vmatprep.subr.bf16.mxu1 %v2333_v23  ;;  %p2049_p8 = pneg %p2048_p9 }
  0x83   : > { %p2056_p0 = pnand %p2055_p13, %p2049_p8 }
  0x84   : > { %1587 = vmatpush3.bf16.msra.mxu0 %v2335_v24  ;;  %1609 = vmatpush3.bf16.msra.mxu1 %v2338_v25 }
  0x85   : > { %1588 = vmatprep.subr.bf16.mxu0 %v2342_v26  ;;  %1610 = vmatprep.subr.bf16.mxu1 %v2347_v28 }
  0x88   : > { %1589 = vmatpush3.bf16.msra.mxu0 %v2345_v27  ;;  %1611 = vmatpush3.bf16.msra.mxu1 %v2349_v29 }
  0x89   : > { %1590 = vmatprep.subr.bf16.mxu0 %v2351_v30  ;;  %1612 = vmatprep.subr.bf16.mxu1 %v2354_v31 }
  0x8c   : > { %1591 = vmatpush3.bf16.msra.mxu0 %v2359_v32  ;;  %1613 = vmatpush3.bf16.msra.mxu1 %v2361_v33 }
  0x8d   : > { %1592 = vmatprep.subr.bf16.mxu0 %v2363_v34  ;;  %1614 = vmatprep.subr.bf16.mxu1 %v2366_v35 }
  0x90   : > { %1593 = vmatpush3.bf16.msra.mxu0 %v2371_v36  ;;  %1615 = vmatpush3.bf16.msra.mxu1 %v2373_v37 }
  0x91   : > { %1594 = vmatprep.subr.bf16.mxu0 %v2381_v38  ;;  %1616 = vmatprep.subr.bf16.mxu1 %v2385_v40 }
  0x94   : > { %1595 = vmatpush3.bf16.msra.mxu0 %v2383_v39  ;;  %1617 = vmatpush3.bf16.msra.mxu1 %v2388_v41 }
  0x95   : > { %1596 = vmatprep.subr.bf16.mxu0 %v2393_v42  ;;  %1618 = vmatprep.subr.bf16.mxu1 %v2397_v44 }
  0x98   : > { %1597 = vmatpush3.bf16.msra.mxu0 %v2395_v43  ;;  %1619 = vmatpush3.bf16.msra.mxu1 %v2400_v45 }
  0x99   : > { %1598 = vmatprep.subr.bf16.mxu0 %v2405_v46  ;;  %1620 = vmatprep.subr.bf16.mxu1 %v2409_v48 }
  0x9c   : > { %1599 = vmatpush3.bf16.msra.mxu0 %v2407_v47  ;;  %1621 = vmatpush3.bf16.msra.mxu1 %v2412_v49 }
  0x9d   : > { %1650 = vmatprep.subr.bf16.mxu1 %v2321_v17  ;;  %1628 = vmatprep.subr.bf16.mxu0 %v2417_v50  ;;  %v675_v17 = vsel %vm650_vm6, 0, %v665_v9 }
 0x13f   : > { %v528_v54 = vpop.f32.mrf.mxu0  ;;  %v633_v56 = vpop.f32.mrf.mxu1 }
 0x140   : > { %v529_v55 = vadd.f32 %v1491_v52, %v528_v54  ;;  %v634_v58 = vadd.f32 %v1491_v52, %v633_v56  ;;  %v1903_v54 = vld [vmem:[#allocation10 + $0x30] sm:$0xff]   ;;  %v1905_v56 = vld [vmem:[#allocation10 + $0x28] sm:$0xff]  }
 0x141   : > { %v1734_v59 = vpop.f32.mrf.mxu0  ;;  %v1754_v61 = vpop.f32.mrf.mxu1 }
 0x142   : > { %v534_v60 = vpack.c.bf16 %v529_v55, %v529_v55  ;;  %v639_v0 = vpack.c.bf16 %v634_v58, %v634_v58  ;;  %v1904_v55 = vld [vmem:[#allocation10 + $0x68] sm:$0xff]   ;;  %v1906_v58 = vld [vmem:[#allocation10 + $0x60] sm:$0xff]  }
 0x143   : > { %v531_v1 = vpop.f32.mrf.mxu0  ;;  %v636_v3 = vpop.f32.mrf.mxu1  ;;  %v1907_v59 = vld [vmem:[#allocation10 + $0x20] sm:$0xff]  }
 0x144   : > { %v655_v2 = vsel %vm2434_vm3, %v534_v60, 0  ;;  %v641_v4 = vshrl.u32 %v639_v0, 16  ;;  %v644_v11 = vshll.u32 %v639_v0, 16  ;;  %v1908_v60 = vld [vmem:[#allocation10 + $0x58] sm:$0xff]  }
 0x145   : > { %v1735_v5 = vpop.f32.mrf.mxu0  ;;  %v667_v6 = vshrl.u32 %v655_v2, 16  ;;  %v670_v7 = vshll.u32 %v655_v2, 16  ;;  %v1755_v8 = vpop.f32.mrf.mxu1 }
 0x146   : > { %v643_v10 = vrot.slane %v641_v4, 7 }
 0x147   : > { %v669_v12 = vrot.slane %v667_v6, 7 }
 0x148   : > { %v646_v13 = vor.u32 %v644_v11, %v643_v10 }
 0x149   : > { %v672_v14 = vor.u32 %v670_v7, %v669_v12 }
 0x14a   : > { %v651_v18 = vsel %vm650_vm6, 0, %v646_v13 }
 0x14b   : > { %v676_v52 = vsel %vm650_vm6, 0, %v672_v14  ;;  %919 = vmatprep.mubr.bf16.mxu0 %v651_v18  ;;  %v687_v61 = vshll.u32 %v651_v18, 16 }
 0x14c   : > { %1055 = vmatprep.mubr.bf16.mxu1 %v676_v52  ;;  %920 = vmatmul.mubr.bf16.vlgmr.msra.gmra.mxu0 %v2442_v15 }
 0x14d   : > { %1056 = vmatmul.mubr.bf16.vlgmr.msra.gmra.mxu1 %v675_v17  ;;  %1629 = vmatpush3.bf16.msra.mxu0 %v2444_v16 }
 0x14e   : > { %1191 = vmatprep.mubr.bf16.mxu0 %v655_v2  ;;  %1651 = vmatpush3.bf16.msra.mxu1 %v2325_v20  ;;  %v1909_v20 = vld [vmem:[#allocation10 + $0x18] sm:$0xff]  }
 0x14f   : > { %1240 = vmatprep.mubr.bf16.mxu1 %v655_v2  ;;  %1630 = vmatprep.subr.bf16.mxu0 %v1902_v53 }
 0x150   : > { %1652 = vmatprep.subr.bf16.mxu1 %v2330_v22  ;;  %v1910_v22 = vld [vmem:[#allocation10 + $0x50] sm:$0xff]  }
 0x151   : > { %1631 = vmatpush3.bf16.msra.mxu0 %v1903_v54 }
 0x152   : > { %1653 = vmatpush3.bf16.msra.mxu1 %v2335_v24  ;;  %1632 = vmatprep.subr.bf16.mxu0 %v1904_v55  ;;  %v1911_v24 = vld [vmem:[#allocation10 + $0x10] sm:$0xff]  }
 0x153   : > { %1654 = vmatprep.subr.bf16.mxu1 %v2342_v26  ;;  %v1912_v26 = vld [vmem:[#allocation10 + $0x48] sm:$0xff]  }
 0x155   : > { %1633 = vmatpush3.bf16.msra.mxu0 %v1905_v56 }
 0x156   : > { %1655 = vmatpush3.bf16.msra.mxu1 %v2345_v27  ;;  %1634 = vmatprep.subr.bf16.mxu0 %v1906_v58  ;;  %v1913_v27 = vld [vmem:[#allocation10 + $0x8] sm:$0xff]  }
 0x157   : > { %1656 = vmatprep.subr.bf16.mxu1 %v2351_v30  ;;  %v1914_v30 = vld [vmem:[#allocation10 + $0x40] sm:$0xff]  }
 0x159   : > { %1635 = vmatpush3.bf16.msra.mxu0 %v1907_v59 }
 0x15a   : > { %1657 = vmatpush3.bf16.msra.mxu1 %v2359_v32  ;;  %1636 = vmatprep.subr.bf16.mxu0 %v1908_v60  ;;  %v1915_v32 = vld [vmem:[#allocation10] sm:$0xff]  }
 0x15b   : > { %1658 = vmatprep.subr.bf16.mxu1 %v2363_v34  ;;  %v689_v34 = vrot.slane %v687_v61, 1 }
 0x15d   : > { %1637 = vmatpush3.bf16.msra.mxu0 %v1909_v20 }
 0x15e   : > { %1659 = vmatpush3.bf16.msra.mxu1 %v2371_v36  ;;  %1638 = vmatprep.subr.bf16.mxu0 %v1910_v22  ;;  %v685_v36 = vshrl.u32 %v651_v18, 16 }
 0x15f   : > { %1660 = vmatprep.subr.bf16.mxu1 %v2381_v38 }
 0x160   : > { %v690_v38 = vor.u32 %v689_v34, %v685_v36 }
 0x161   : > { %1639 = vmatpush3.bf16.msra.mxu0 %v1911_v24 }
 0x162   : > { %1661 = vmatpush3.bf16.msra.mxu1 %v2383_v39  ;;  %1640 = vmatprep.subr.bf16.mxu0 %v1912_v26  ;;  %v694_v39 = vsel %vm2434_vm3, %v690_v38, 0 }
 0x163   : > { %1662 = vmatprep.subr.bf16.mxu1 %v2393_v42 }
 0x165   : > { %1641 = vmatpush3.bf16.msra.mxu0 %v1913_v27 }
 0x166   : > { %1663 = vmatpush3.bf16.msra.mxu1 %v2395_v43  ;;  %1642 = vmatprep.subr.bf16.mxu0 %v1914_v30 }
 0x167   : > { %1664 = vmatprep.subr.bf16.mxu1 %v2405_v46 }
 0x169   : > { %1643 = vmatpush3.bf16.msra.mxu0 %v1915_v32 }
 0x16a   : > { %1665 = vmatpush3.bf16.msra.mxu1 %v2407_v47  ;;  %1672 = vmatprep.subr.bf16.mxu0 %v2323_v19  ;;  %v680_v19 = vshll.u32 %v2442_v15, 16 }
 0x16b   : > { %1694 = vmatprep.subr.bf16.mxu1 %v2417_v50 }
 0x16c   : > { %1192 = vmatmul.mubr.bf16.vlgmr.msra.gmra.mxu0 %v2428_v51 }
 0x16d   : > { %1241 = vmatmul.mubr.bf16.vlgmr.msra.gmra.mxu1 %v2428_v51  ;;  %1673 = vmatpush3.bf16.msra.mxu0 %v2327_v21  ;;  %v678_v21 = vshrl.u32 %v2442_v15, 16  ;;  %v1557_v51 = vld [vmem:[%s2554_s8] ss:$0 sm:$0xff] }
 0x16e   : > { %1280 = vmatprep.mubr.bf16.mxu0 %v651_v18  ;;  %1695 = vmatpush3.bf16.msra.mxu1 %v2444_v16 }
 0x16f   : > { %1320 = vmatprep.mubr.bf16.mxu1 %v694_v39  ;;  %1674 = vmatprep.subr.bf16.mxu0 %v2333_v23  ;;  %v682_v23 = vrot.slane %v680_v19, 1 }
 0x170   : > { %1696 = vmatprep.subr.bf16.mxu1 %v1902_v53 }
 0x171   : > { %1675 = vmatpush3.bf16.msra.mxu0 %v2338_v25  ;;  %v683_v25 = vor.u32 %v682_v23, %v678_v21 }
 0x172   : > { %1697 = vmatpush3.bf16.msra.mxu1 %v1903_v54  ;;  %1676 = vmatprep.subr.bf16.mxu0 %v2347_v28 }
 0x173   : > { %1698 = vmatprep.subr.bf16.mxu1 %v1904_v55  ;;  %v693_v28 = vsel %vm2434_vm3, %v683_v25, 0 }
 0x175   : > { %1677 = vmatpush3.bf16.msra.mxu0 %v2349_v29 }
 0x176   : > { %1699 = vmatpush3.bf16.msra.mxu1 %v1905_v56  ;;  %1678 = vmatprep.subr.bf16.mxu0 %v2354_v31 }
 0x177   : > { %1700 = vmatprep.subr.bf16.mxu1 %v1906_v58 }
 0x179   : > { %1679 = vmatpush3.bf16.msra.mxu0 %v2361_v33 }
 0x17a   : > { %1701 = vmatpush3.bf16.msra.mxu1 %v1907_v59  ;;  %1680 = vmatprep.subr.bf16.mxu0 %v2366_v35 }
 0x17b   : > { %1702 = vmatprep.subr.bf16.mxu1 %v1908_v60 }
 0x17d   : > { %1681 = vmatpush3.bf16.msra.mxu0 %v2373_v37 }
 0x17e   : > { %1703 = vmatpush3.bf16.msra.mxu1 %v1909_v20  ;;  %1682 = vmatprep.subr.bf16.mxu0 %v2385_v40 }
 0x17f   : > { %1704 = vmatprep.subr.bf16.mxu1 %v1910_v22 }
 0x181   : > { %1683 = vmatpush3.bf16.msra.mxu0 %v2388_v41 }
 0x182   : > { %1705 = vmatpush3.bf16.msra.mxu1 %v1911_v24  ;;  %1684 = vmatprep.subr.bf16.mxu0 %v2397_v44 }
 0x183   : > { %1706 = vmatprep.subr.bf16.mxu1 %v1912_v26 }
 0x185   : > { %1685 = vmatpush3.bf16.msra.mxu0 %v2400_v45 }
 0x186   : > { %1707 = vmatpush3.bf16.msra.mxu1 %v1913_v27  ;;  %1686 = vmatprep.subr.bf16.mxu0 %v2409_v48 }
 0x187   : > { %1708 = vmatprep.subr.bf16.mxu1 %v1914_v30 }
 0x189   : > { %1687 = vmatpush3.bf16.msra.mxu0 %v2412_v49 }
 0x18a   : > { %1709 = vmatpush3.bf16.msra.mxu1 %v1915_v32 }
 0x18c   : > { %1281 = vmatmul.mubr.bf16.vlgmr.msra.gmra.mxu0 %v2442_v15 }
 0x18d   : > { %1321 = vmatmul.mubr.bf16.vlgmr.msra.gmra.mxu1 %v693_v28 }
 0x20c   : > { %v1600_v29 = vpop.f32.mrf.mxu0 }
 0x20d   : > { %v1622_v31 = vpop.f32.mrf.mxu1 }
 0x20e   : > { %v1601_v33 = vpop.f32.mrf.mxu0 }
 0x20f   : > { %v1623_v35 = vpop.f32.mrf.mxu1  ;;  %v1602_v43 = vadd.f32 %v1601_v33, %v1600_v29 }
 0x210   : > { %v1603_v37 = vpop.f32.mrf.mxu0  ;;  %v1624_v44 = vadd.f32 %v1623_v35, %v1622_v31 }
 0x211   : > { %v1625_v40 = vpop.f32.mrf.mxu1 }
 0x212   : > { %v1604_v41 = vpop.f32.mrf.mxu0  ;;  %v1058_v48 = vadd.f32 %v1624_v44, %v1602_v43 }
 0x213   : > { %v1626_v42 = vpop.f32.mrf.mxu1 }
 0x22c   : > { %v1644_v45 = vpop.f32.mrf.mxu0 }
 0x22d   : > { %v1666_v46 = vpop.f32.mrf.mxu1 }
 0x22e   : > { %v1645_v47 = vpop.f32.mrf.mxu0 }
 0x22f   : > { %v1646_v49 = vadd.f32 %v1645_v47, %v1644_v45  ;;  %v1667_v50 = vpop.f32.mrf.mxu1 }
 0x230   : > { %v1647_v57 = vpop.f32.mrf.mxu0  ;;  %v1668_v7 = vadd.f32 %v1667_v50, %v1666_v46 }
 0x231   : > { %v1199_v62 = vadd.f32 %v1646_v49, %v1058_v48  ;;  %v1669_v63 = vpop.f32.mrf.mxu1 }
 0x232   : > { %v1648_v0 = vpop.f32.mrf.mxu0 }
 0x233   : > { %v1207_v1 = vadd.f32 %v1557_v51, %v1199_v62  ;;  %v1670_v2 = vpop.f32.mrf.mxu1 }
 0x235   : > { %v1330_v3 = vmax.f32 %v1207_v1, 0.0 }
 0x237   : > { %1331 = vst [vmem:[%s411_s24] sm:$0xff] %v1330_v3 }
 0x24c   : > { %v1688_v4 = vpop.f32.mrf.mxu0 }
 0x24d   : > { %v1710_v5 = vpop.f32.mrf.mxu1 }
 0x24e   : > { %v1689_v6 = vpop.f32.mrf.mxu0 }
 0x24f   : > { %v1690_v8 = vadd.f32 %v1689_v6, %v1688_v4  ;;  %v1711_v9 = vpop.f32.mrf.mxu1 }
 0x250   : > { %v1712_v10 = vadd.f32 %v1711_v9, %v1710_v5  ;;  %v1691_v11 = vpop.f32.mrf.mxu0 }
 0x251   : > { %v1283_v12 = vadd.f32 %v1690_v8, %v1668_v7  ;;  %v1713_v13 = vpop.f32.mrf.mxu1 }
 0x252   : > { %v1692_v14 = vpop.f32.mrf.mxu0 }
 0x253   : > { %v1328_v15 = vadd.f32 %v1712_v10, %v1283_v12  ;;  %v1714_v16 = vpop.f32.mrf.mxu1 }
 0x255   : > { %v1329_v17 = vadd.f32 %v1557_v51, %v1328_v15 }
 0x257   : > { %v1332_v18 = vmax.f32 %v1329_v17, 0.0 }
 0x259   : > { %1558 = vst [vmem:[%s411_s24 + $0x8] sm:$0xff] %v1332_v18 }
 0x25a   : > { %2059 = shalt.err (!%p2056_p0)
}
 0x25b   : > { %s2060_s22 = scalar_lea.hbm %s2502_s25, 256  ;;  %s2064_s21 = scalar_lea.hbm %s2555_s9, 512 }
 0x25c   : > { %p2061_p3 = scmp.ne.s32.totalorder %s2502_s25, %s2060_s22  ;;  %p2065_p12 = scmp.lt.s32.totalorder %s2502_s25, %s2555_s9 }
 0x25d   : > { %p2066_p10 = scmp.lt.s32.totalorder %s2064_s21, %s2060_s22 }
 0x25e   : > { %p2062_p1 = pnand %p2061_p3, %p2220_p5 }
 0x25f   : > { %p2067_p4 = por %p2066_p10, %p2065_p12 }
 0x260   : > { %p2063_p2 = pneg %p2062_p1 }
 0x262   : > { %p2068_p9 = pnand %p2067_p4, %p2063_p2 }
 0x264   : > { %2071 = shalt.err (!%p2068_p9)
}
 0x265   : > { %s2130_s17 = smov 128   ;;  %s2131_s26 = smov 8  }
 0x266   : > { %1776 = dma.vmem_to_hbm [thread:$0]  (%p2220_p5), %s2497_s29, 256, %s2502_s25, %s2506_s27, %s2130_s17, %s2130_s17, %s2131_s26  }
 0x267 PF: > { %p1808_p8 = scmp.ge.s32.totalorder %s2118_s12, 2  ;;  %s1364_s14 = sand.u32 1, %s2106_s30  }
 0x268   : > { %s1365_s13 = scalar_lea.sflag [#allocation4], %s1364_s14 }
 0x269   : > { %p1795_p7 = pnand %p1808_p8, %p2224_p6 }
 0x26b   : > { %p1796_p11 = pneg %p1795_p7 }
 0x26d   : > { %2101 = dma.done.wait (%p1796_p11), %s1365_s13, 256  }
 0x26e   : > { %2103 = vsyncadd (%p1796_p11), %s1365_s13, 4294967040  ;;  %s2573_s28 = sld [smem:[#allocation16_spill]]  ;;  %p22_p13 = scmp.ge.s32.totalorder %s2207_s15, 4  }
 0x26f   : > { %s2574_s30 = smov %s2110_s10  ;;  %s2575_s10 = smov %s2114_s11 }
 0x270   : > { %s2577_s12 = smov %s2207_s15  ;;  %24 = sbr.rel (!%p22_p13) target bundleno = 8 (0x8), region = 117 }
 0x274   : > { %s2576_s11 = smov %s2573_s28 }
 0x275   :  { %1370 = vsyncpa [#allocation3], 1 }
 0x276   :  { %1372 = vsyncpa [#allocation3 + $0x1], 1 }
 0x277   :  { %1373 = vsyncpa [#allocation6], 1 }
 0x278   :  { %1374 = vsyncpa [#allocation9], 1 }
 0x279   :  { %1375 = vsyncpa [#allocation4], 1 }
 0x27a   :  { %1377 = vsyncpa [#allocation4 + $0x1], 1 }

</bundles_post_ra>
